<compile_context>
chip_gen: v7x
topology: tpu7x:2x2x1
jax: 0.10.0
libtpu: 0.0.40
codegen_flags: <defaults>
</compile_context>

<pallas_src>
import functools

import jax
import jax.numpy as jnp
from jax.experimental import pallas as pl
from jax.experimental.pallas import tpu as pltpu


# ----------------------------------------------------------------------------
# Fused encoder + decoder kernel (whole batch block per grid step)
# ----------------------------------------------------------------------------
def fused_encdec_kernel(src_ref, tgt_ref, w_enc_ref, b_enc_ref,
                        w_q_ref, b_q_ref, w_out_ref, b_out_ref,
                        out_ref, *, b_blk, s_len, t_len):
    e = src_ref.shape[-1]
    h = w_enc_ref.shape[-1]

    # --- Encoder: enc = tanh(X @ W_enc + b_enc), M-dim = b_blk * S ---
    x = src_ref[...].reshape(b_blk * s_len, e)
    enc_flat = jnp.tanh(
        jnp.dot(x, w_enc_ref[...], preferred_element_type=jnp.float32)
        + b_enc_ref[...])                                   # (1,H) bias broadcasts
    enc = enc_flat.reshape(b_blk, s_len, h)                 # stays in VMEM

    # --- Decoder query projection: M-dim = b_blk * T ---
    y = tgt_ref[...].reshape(b_blk * t_len, e)
    q_flat = jnp.tanh(
        jnp.dot(y, w_q_ref[...], preferred_element_type=jnp.float32)
        + b_q_ref[...])
    q = q_flat.reshape(b_blk, t_len, h)

    # --- Scaled dot-product attention (contract last dims, no explicit .T) ---
    scale = 1.0 / jnp.sqrt(jnp.float32(h))
    scores = jnp.einsum('bth,bsh->bts', q, enc,
                        preferred_element_type=jnp.float32) * scale
    m = jnp.max(scores, axis=-1, keepdims=True)
    p = jnp.exp(scores - m)
    denom = jnp.sum(p, axis=-1, keepdims=True)
    attn = p * pl.reciprocal(denom, approx=True)            # divide on the EUP
    ctx = jnp.einsum('bts,bsh->bth', attn, enc,
                     preferred_element_type=jnp.float32)    # (b, T, H)

    # --- Output projection into a lane-dense (rows, V_pad) slab ---
    ctx_flat = ctx.reshape(b_blk * t_len, h)
    logits = (jnp.dot(ctx_flat, w_out_ref[...],
                      preferred_element_type=jnp.float32)
              + b_out_ref[...])
    out_ref[...] = logits


def run_fused(src_emb, tgt_emb, w_enc, b_enc2d, w_q, b_q2d, w_out_p, b_out_p2d):
    b, s, e = src_emb.shape
    _, t, _ = tgt_emb.shape
    h = w_enc.shape[1]
    v_pad = w_out_p.shape[1]

    kern = functools.partial(fused_encdec_kernel, b_blk=b, s_len=s, t_len=t)
    return pl.pallas_call(
        kern,
        out_shape=jax.ShapeDtypeStruct((b * t, v_pad), jnp.float32),
        grid_spec=pltpu.PrefetchScalarGridSpec(
            num_scalar_prefetch=0,
            grid=(1,),                                      # whole batch in one block
            in_specs=[
                pl.BlockSpec((b, s, e), lambda i: (0, 0, 0)),      # src embeddings
                pl.BlockSpec((b, t, e), lambda i: (0, 0, 0)),      # tgt embeddings
                pl.BlockSpec((e, h), lambda i: (0, 0)),            # W_enc
                pl.BlockSpec((1, h), lambda i: (0, 0)),            # b_enc (2-D, lane-aligned)
                pl.BlockSpec((e, h), lambda i: (0, 0)),            # W_q
                pl.BlockSpec((1, h), lambda i: (0, 0)),            # b_q
                pl.BlockSpec((h, v_pad), lambda i: (0, 0)),        # W_out (padded vocab)
                pl.BlockSpec((1, v_pad), lambda i: (0, 0)),        # b_out (padded vocab)
            ],
            out_specs=pl.BlockSpec((b * t, v_pad), lambda i: (0, 0)),
        ),
        compiler_params=pltpu.CompilerParams(
            dimension_semantics=("parallel",)),             # batch axis; free on 1-TC chips
    )(src_emb, tgt_emb, w_enc, b_enc2d, w_q, b_q2d, w_out_p, b_out_p2d)


# ----------------------------------------------------------------------------
# EncoderDecoderParser.forward equivalent
# ----------------------------------------------------------------------------
class EncoderDecoderParserPallas:
    """forward(data_batch) = decoder(*encoder(data_batch)) — encoder returns a tuple.

    The encoder's matmul+tanh is mathematically part of the fused Pallas kernel
    invoked by decoder() (so the encoder states never leave VMEM); encoder()
    itself only does the embedding gather (glue) and hands the source
    embeddings to the decoder through the tuple dispatch, preserving the
    original module's forward() semantics end-to-end.
    """

    LANE = 128

    def __init__(self, params):
        self.p = params
        v = params["w_out"].shape[1]
        v_pad = ((v + self.LANE - 1) // self.LANE) * self.LANE
        self.v = v
        self.v_pad = v_pad
        h = params["w_out"].shape[0]
        # Pad the output projection once so the kernel's store path is lane-dense.
        self.w_out_p = jnp.zeros((h, v_pad), jnp.float32).at[:, :v].set(params["w_out"])
        self.b_out_p = jnp.zeros((1, v_pad), jnp.float32).at[:, :v].set(params["b_out"])
        # Biases as 2-D lane-aligned blocks.
        self.b_enc2d = params["b_enc"].reshape(1, -1)
        self.b_q2d = params["b_q"].reshape(1, -1)

    def encoder(self, data_batch):
        src_tok = data_batch["src_tokens"]                   # (B, S) int32
        src_emb = jnp.take(self.p["src_embed"], src_tok, axis=0)  # glue: gather
        return (src_emb,)                                    # tuple branch of forward()

    def decoder(self, src_emb):
        tgt_tok = self.p["tgt_tokens"]                       # (B, T) int32
        tgt_emb = jnp.take(self.p["tgt_embed"], tgt_tok, axis=0)  # glue: gather
        b, t, _ = tgt_emb.shape
        logits_flat = run_fused(src_emb, tgt_emb,
                                self.p["w_enc"], self.b_enc2d,
                                self.p["w_q"], self.b_q2d,
                                self.w_out_p, self.b_out_p)   # (B*T, V_pad)
        return logits_flat[:, :self.v].reshape(b, t, self.v)  # glue: strip pad

    def forward(self, data_batch):
        encoder_output = self.encoder(data_batch)
        if isinstance(encoder_output, tuple):
            return self.decoder(*encoder_output)
        if isinstance(encoder_output, dict):
            return self.decoder(**encoder_output)
        return self.decoder(encoder_output)

    # TODO(synk): decode() (beam/greedy search) has no clean single-kernel
    # Pallas equivalent; only forward() is implemented here.


# ----------------------------------------------------------------------------
# Pure-JAX reference for verification
# ----------------------------------------------------------------------------
def reference_forward(params, data_batch):
    src_tok = data_batch["src_tokens"]
    b, s = src_tok.shape
    src_emb = jnp.take(params["src_embed"], src_tok, axis=0)
    enc = jnp.tanh(src_emb.reshape(b * s, -1) @ params["w_enc"] + params["b_enc"])
    enc = enc.reshape(b, s, -1)
    tgt_emb = jnp.take(params["tgt_embed"], params["tgt_tokens"], axis=0)
    q = jnp.tanh(jnp.einsum("bte,eh->bth", tgt_emb, params["w_q"]) + params["b_q"])
    scores = jnp.einsum("bth,bsh->bts", q, enc) / jnp.sqrt(jnp.float32(q.shape[-1]))
    attn = jax.nn.softmax(scores, axis=-1)
    ctx = jnp.einsum("bts,bsh->bth", attn, enc)
    return jnp.einsum("bth,hv->btv", ctx, params["w_out"]) + params["b_out"]


if __name__ == "__main__":
    # Small shapes: batch=2, src_seq=8, tgt_seq=4, emb=32, hidden=32, vocab=64
    B, S, T, E, H, V = 2, 8, 4, 32, 32, 64
    SRC_VOCAB, TGT_VOCAB = 50, V

    key = jax.random.PRNGKey(0)
    keys = jax.random.split(key, 10)

    params = {
        "src_embed": 0.1 * jax.random.normal(keys[0], (SRC_VOCAB, E), jnp.float32),
        "tgt_embed": 0.1 * jax.random.normal(keys[1], (TGT_VOCAB, E), jnp.float32),
        "w_enc": 0.1 * jax.random.normal(keys[2], (E, H), jnp.float32),
        "b_enc": 0.01 * jax.random.normal(keys[3], (H,), jnp.float32),
        "w_q": 0.1 * jax.random.normal(keys[4], (E, H), jnp.float32),
        "b_q": 0.01 * jax.random.normal(keys[5], (H,), jnp.float32),
        "w_out": 0.1 * jax.random.normal(keys[6], (H, V), jnp.float32),
        "b_out": 0.01 * jax.random.normal(keys[7], (V,), jnp.float32),
        "tgt_tokens": jax.random.randint(keys[8], (B, T), 0, TGT_VOCAB, jnp.int32),
    }
    data_batch = {
        "src_tokens": jax.random.randint(keys[9], (B, S), 0, SRC_VOCAB, jnp.int32),
    }

    model = EncoderDecoderParserPallas(params)
    logits = model.forward(data_batch)
    logits = jax.block_until_ready(logits)

    ref = reference_forward(params, data_batch)
    assert logits.shape == (B, T, V)
    # Tolerance loosened slightly vs. the exact-divide version: the softmax
    # denominator now uses the EUP approximate reciprocal.
    max_err = float(jnp.max(jnp.abs(logits - ref)))
    assert max_err < 1e-3, f"mismatch vs reference, max abs err = {max_err}"

    print("KERNEL_OK")
</pallas_src>

<mosaic_0001>
module attributes {stable_mosaic.version = 11 : i64} {
  func.func @fused_encdec_kernel(%arg0: i32, %arg1: memref<2x8x32xf32, #tpu.memory_space<vmem>>, %arg2: memref<2x4x32xf32, #tpu.memory_space<vmem>>, %arg3: memref<32x32xf32, #tpu.memory_space<vmem>>, %arg4: memref<1x32xf32, #tpu.memory_space<vmem>>, %arg5: memref<32x32xf32, #tpu.memory_space<vmem>>, %arg6: memref<1x32xf32, #tpu.memory_space<vmem>>, %arg7: memref<32x128xf32, #tpu.memory_space<vmem>>, %arg8: memref<1x128xf32, #tpu.memory_space<vmem>>, %arg9: memref<8x128xf32, #tpu.memory_space<vmem>>) attributes {dimension_semantics = [#tpu.dimension_semantics<parallel>], iteration_bounds = array<i64: 1>, scalar_prefetch = 0 : i64, scratch_operands = 0 : i64, tpu.core_type = #tpu.core_type<tc>, window_params = [{pipeline_mode = #tpu.pipeline_mode<synchronous>, transform_indices = @transform_0, window_bounds = array<i64: 2, 8, 32>}, {pipeline_mode = #tpu.pipeline_mode<synchronous>, transform_indices = @transform_1, window_bounds = array<i64: 2, 4, 32>}, {pipeline_mode = #tpu.pipeline_mode<synchronous>, transform_indices = @transform_2, window_bounds = array<i64: 32, 32>}, {pipeline_mode = #tpu.pipeline_mode<synchronous>, transform_indices = @transform_3, window_bounds = array<i64: 1, 32>}, {pipeline_mode = #tpu.pipeline_mode<synchronous>, transform_indices = @transform_4, window_bounds = array<i64: 32, 32>}, {pipeline_mode = #tpu.pipeline_mode<synchronous>, transform_indices = @transform_5, window_bounds = array<i64: 1, 32>}, {pipeline_mode = #tpu.pipeline_mode<synchronous>, transform_indices = @transform_6, window_bounds = array<i64: 32, 128>}, {pipeline_mode = #tpu.pipeline_mode<synchronous>, transform_indices = @transform_7, window_bounds = array<i64: 1, 128>}, {pipeline_mode = #tpu.pipeline_mode<synchronous>, transform_indices = @transform_8, window_bounds = array<i64: 8, 128>}]} {
    %c0 = arith.constant 0 : index
    %c0_0 = arith.constant 0 : index
    %c0_1 = arith.constant 0 : index
    %0 = vector.load %arg1[%c0, %c0_0, %c0_1] : memref<2x8x32xf32, #tpu.memory_space<vmem>>, vector<2x8x32xf32>
    %1 = vector.shape_cast %0 : vector<2x8x32xf32> to vector<16x32xf32>
    %c0_2 = arith.constant 0 : index
    %c0_3 = arith.constant 0 : index
    %2 = vector.load %arg3[%c0_2, %c0_3] : memref<32x32xf32, #tpu.memory_space<vmem>>, vector<32x32xf32>
    %cst = arith.constant dense<0.000000e+00> : vector<16x32xf32>
    %3 = tpu.matmul %1, %2, %cst {dimension_numbers = #tpu.dot_dimension_numbers<[1], [0], [0], [1], [0, 0, 1, 1], [], []>} : vector<16x32xf32>, vector<32x32xf32>, vector<16x32xf32> -> vector<16x32xf32>
    %c0_4 = arith.constant 0 : index
    %c0_5 = arith.constant 0 : index
    %4 = vector.load %arg4[%c0_4, %c0_5] : memref<1x32xf32, #tpu.memory_space<vmem>>, vector<1x32xf32>
    %5 = vector.broadcast %4 : vector<1x32xf32> to vector<16x32xf32>
    %6 = arith.addf %3, %5 : vector<16x32xf32>
    %7 = math.tanh %6 : vector<16x32xf32>
    %8 = vector.shape_cast %7 : vector<16x32xf32> to vector<2x8x32xf32>
    %c0_6 = arith.constant 0 : index
    %c0_7 = arith.constant 0 : index
    %c0_8 = arith.constant 0 : index
    %9 = vector.load %arg2[%c0_6, %c0_7, %c0_8] : memref<2x4x32xf32, #tpu.memory_space<vmem>>, vector<2x4x32xf32>
    %10 = vector.shape_cast %9 : vector<2x4x32xf32> to vector<8x32xf32>
    %c0_9 = arith.constant 0 : index
    %c0_10 = arith.constant 0 : index
    %11 = vector.load %arg5[%c0_9, %c0_10] : memref<32x32xf32, #tpu.memory_space<vmem>>, vector<32x32xf32>
    %cst_11 = arith.constant dense<0.000000e+00> : vector<8x32xf32>
    %12 = tpu.matmul %10, %11, %cst_11 {dimension_numbers = #tpu.dot_dimension_numbers<[1], [0], [0], [1], [0, 0, 1, 1], [], []>} : vector<8x32xf32>, vector<32x32xf32>, vector<8x32xf32> -> vector<8x32xf32>
    %c0_12 = arith.constant 0 : index
    %c0_13 = arith.constant 0 : index
    %13 = vector.load %arg6[%c0_12, %c0_13] : memref<1x32xf32, #tpu.memory_space<vmem>>, vector<1x32xf32>
    %14 = vector.broadcast %13 : vector<1x32xf32> to vector<8x32xf32>
    %15 = arith.addf %12, %14 : vector<8x32xf32>
    %16 = math.tanh %15 : vector<8x32xf32>
    %17 = vector.shape_cast %16 : vector<8x32xf32> to vector<2x4x32xf32>
    %cst_14 = arith.constant 3.200000e+01 : f32
    %18 = math.sqrt %cst_14 : f32
    %cst_15 = arith.constant 1.000000e+00 : f32
    %19 = arith.divf %cst_15, %18 : f32
    "tpu.trace_start"() <{level = 10 : i32, message = "bth,bsh->bts"}> : () -> ()
    %cst_16 = arith.constant dense<0.000000e+00> : vector<2x4x8xf32>
    %20 = tpu.matmul %17, %8, %cst_16 {dimension_numbers = #tpu.dot_dimension_numbers<[2], [2], [1], [1], [0, 0, 0, 1, 1, 1], [0], [0]>} : vector<2x4x32xf32>, vector<2x8x32xf32>, vector<2x4x8xf32> -> vector<2x4x8xf32>
    "tpu.trace_stop"() : () -> ()
    %21 = vector.broadcast %19 : f32 to vector<2x4x8xf32>
    %22 = arith.mulf %20, %21 : vector<2x4x8xf32>
    %cst_17 = arith.constant dense<0xFF800000> : vector<2x4xf32>
    %23 = vector.multi_reduction <maximumf>, %22, %cst_17 [2] : vector<2x4x8xf32> to vector<2x4xf32>
    %24 = vector.shape_cast %23 : vector<2x4xf32> to vector<2x4x1xf32>
    %25 = vector.broadcast %24 : vector<2x4x1xf32> to vector<2x4x8xf32>
    %26 = arith.subf %22, %25 : vector<2x4x8xf32>
    %27 = math.exp %26 : vector<2x4x8xf32>
    %cst_18 = arith.constant dense<0.000000e+00> : vector<2x4xf32>
    %28 = vector.multi_reduction <add>, %27, %cst_18 [2] : vector<2x4x8xf32> to vector<2x4xf32>
    %29 = vector.shape_cast %28 : vector<2x4xf32> to vector<2x4x1xf32>
    %30 = tpu.reciprocal %29 {approx = true} : vector<2x4x1xf32> -> vector<2x4x1xf32>
    %31 = vector.broadcast %30 : vector<2x4x1xf32> to vector<2x4x8xf32>
    %32 = arith.mulf %27, %31 : vector<2x4x8xf32>
    "tpu.trace_start"() <{level = 10 : i32, message = "bts,bsh->bth"}> : () -> ()
    %cst_19 = arith.constant dense<0.000000e+00> : vector<2x4x32xf32>
    %33 = tpu.matmul %32, %8, %cst_19 {dimension_numbers = #tpu.dot_dimension_numbers<[2], [1], [1], [2], [0, 0, 0, 1, 1, 2], [0], [0]>} : vector<2x4x8xf32>, vector<2x8x32xf32>, vector<2x4x32xf32> -> vector<2x4x32xf32>
    "tpu.trace_stop"() : () -> ()
    %34 = vector.shape_cast %33 : vector<2x4x32xf32> to vector<8x32xf32>
    %c0_20 = arith.constant 0 : index
    %c0_21 = arith.constant 0 : index
    %35 = vector.load %arg7[%c0_20, %c0_21] : memref<32x128xf32, #tpu.memory_space<vmem>>, vector<32x128xf32>
    %cst_22 = arith.constant dense<0.000000e+00> : vector<8x128xf32>
    %36 = tpu.matmul %34, %35, %cst_22 {dimension_numbers = #tpu.dot_dimension_numbers<[1], [0], [0], [1], [0, 0, 1, 1], [], []>} : vector<8x32xf32>, vector<32x128xf32>, vector<8x128xf32> -> vector<8x128xf32>
    %c0_23 = arith.constant 0 : index
    %c0_24 = arith.constant 0 : index
    %37 = vector.load %arg8[%c0_23, %c0_24] : memref<1x128xf32, #tpu.memory_space<vmem>>, vector<1x128xf32>
    %38 = vector.broadcast %37 : vector<1x128xf32> to vector<8x128xf32>
    %39 = arith.addf %36, %38 : vector<8x128xf32>
    %c0_25 = arith.constant 0 : index
    %c0_26 = arith.constant 0 : index
    %40 = vector.load %arg9[%c0_25, %c0_26] : memref<8x128xf32, #tpu.memory_space<vmem>>, vector<8x128xf32>
    tpu.vector_store %arg9[%c0_25, %c0_26], %39 {strides = array<i32>} : memref<8x128xf32, #tpu.memory_space<vmem>>, vector<8x128xf32>,
    return
  }
  func.func @transform_0(%arg0: i32) -> (i32, i32, i32) {
    %c0_i32 = arith.constant 0 : i32
    %c0_i32_0 = arith.constant 0 : i32
    %c0_i32_1 = arith.constant 0 : i32
    %c0_i32_2 = arith.constant 0 : i32
    return %c0_i32, %c0_i32_0, %c0_i32_1 : i32, i32, i32
  }
  func.func @transform_1(%arg0: i32) -> (i32, i32, i32) {
    %c0_i32 = arith.constant 0 : i32
    %c0_i32_0 = arith.constant 0 : i32
    %c0_i32_1 = arith.constant 0 : i32
    %c0_i32_2 = arith.constant 0 : i32
    return %c0_i32, %c0_i32_0, %c0_i32_1 : i32, i32, i32
  }
  func.func @transform_2(%arg0: i32) -> (i32, i32) {
    %c0_i32 = arith.constant 0 : i32
    %c0_i32_0 = arith.constant 0 : i32
    %c0_i32_1 = arith.constant 0 : i32
    return %c0_i32, %c0_i32_0 : i32, i32
  }
  func.func @transform_3(%arg0: i32) -> (i32, i32) {
    %c0_i32 = arith.constant 0 : i32
    %c0_i32_0 = arith.constant 0 : i32
    %c0_i32_1 = arith.constant 0 : i32
    return %c0_i32, %c0_i32_0 : i32, i32
  }
  func.func @transform_4(%arg0: i32) -> (i32, i32) {
    %c0_i32 = arith.constant 0 : i32
    %c0_i32_0 = arith.constant 0 : i32
    %c0_i32_1 = arith.constant 0 : i32
    return %c0_i32, %c0_i32_0 : i32, i32
  }
  func.func @transform_5(%arg0: i32) -> (i32, i32) {
    %c0_i32 = arith.constant 0 : i32
    %c0_i32_0 = arith.constant 0 : i32
    %c0_i32_1 = arith.constant 0 : i32
    return %c0_i32, %c0_i32_0 : i32, i32
  }
  func.func @transform_6(%arg0: i32) -> (i32, i32) {
    %c0_i32 = arith.constant 0 : i32
    %c0_i32_0 = arith.constant 0 : i32
    %c0_i32_1 = arith.constant 0 : i32
    return %c0_i32, %c0_i32_0 : i32, i32
  }
  func.func @transform_7(%arg0: i32) -> (i32, i32) {
    %c0_i32 = arith.constant 0 : i32
    %c0_i32_0 = arith.constant 0 : i32
    %c0_i32_1 = arith.constant 0 : i32
    return %c0_i32, %c0_i32_0 : i32, i32
  }
  func.func @transform_8(%arg0: i32) -> (i32, i32) {
    %c0_i32 = arith.constant 0 : i32
    %c0_i32_0 = arith.constant 0 : i32
    %c0_i32_1 = arith.constant 0 : i32
    return %c0_i32, %c0_i32_0 : i32, i32
  }
}

</mosaic_0001>

<bundles_post_ra>
// kernel: tpu_custom_call.1
= control target key start
LH: loop header
LB: loop body
LE: loop exit
PB: predicated region body
PF: predicated region fallthrough
CT: control target
= control target key end

     0   :  { %13 = vsyncpa [#allocation3], 0  ;;  %s1173_s0 = inlined_call_operand.hbm [shape: f32[2,8,32], index: 0, kind: input, shape index: {}]   ;;  %s1174_s1 = inlined_call_operand.hbm [shape: f32[2,4,32], index: 1, kind: input, shape index: {}]   ;;  %s1175_s2 = inlined_call_operand.hbm [shape: f32[32,32], index: 2, kind: input, shape index: {}]   ;;  %s1176_s3 = inlined_call_operand.vmem [shape: f32[1,32], index: 3, kind: input, shape index: {}]   ;;  %s1177_s4 = inlined_call_operand.hbm [shape: f32[32,32], index: 4, kind: input, shape index: {}]   ;;  %s1178_s5 = inlined_call_operand.vmem [shape: f32[1,32], index: 5, kind: input, shape index: {}]   ;;  %s1179_s6 = inlined_call_operand.hbm [shape: f32[32,128], index: 6, kind: input, shape index: {}]   ;;  %s1180_s7 = inlined_call_operand.vmem [shape: f32[1,128], index: 7, kind: input, shape index: {}]   ;;  %s1181_s8 = inlined_call_operand.hbm [shape: f32[8,128], index: 8, kind: output, shape index: {}]  }
   0x1   :  { %14 = vsyncpa [#allocation6], 0 }
   0x2   :  { %15 = vsyncpa [#allocation9], 0 }
   0x3   :  { %16 = vsyncpa [#allocation4], 0  ;;  %s990_s27 = smov [#allocation5]   ;;  %s850_s9 = scalar_lea.hbm %s1174_s1, 128 }
   0x4   :  { %s34_s28 = sshll.u32 %s990_s27, 4  ;;  %p851_p0 = scmp.ne.s32.totalorder %s1174_s1, %s850_s9  ;;  %s35_s28 = int_to_ptr.vmem [resolvable:$true] %s34_s28 }
   0x5   :  { %p854_p1 = scmp.lt.u32.totalorder %s850_s9, %s1174_s1 }
   0x7   :  { %p856_p2 = pnand %p854_p1, %p851_p0 }
   0x9   :  { %859 = shalt.err (!%p856_p2)
}
   0xa   :  { %s860_s14 = scalar_lea.vmem %s35_s28, 128  ;;  %p865_p4 = scmp.lt.s32.totalorder %s35_s28, %s35_s28 }
   0xb   :  { %p861_p3 = scmp.ne.s32.totalorder %s35_s28, %s860_s14  ;;  %p866_p5 = scmp.lt.s32.totalorder %s860_s14, %s860_s14 }
   0xd   :  { %p867_p6 = por %p866_p5, %p865_p4 }
   0xf   :  { %p868_p7 = pnand %p867_p6, %p861_p3 }
  0x11   :  { %871 = shalt.err (!%p868_p7)
}
  0x12   :  { %s991_s15 = smov 64   ;;  %s992_s16 = smov 4  }
  0x13   :  { %40 = dma.hbm_to_vmem [thread:$0]  %s1174_s1, 128, %s35_s28, [#allocation6], %s991_s15, %s991_s15, %s992_s16  }
  0x14   :  { %s993_s19 = smov [#allocation8]   ;;  %s994_s21 = smov [#allocation2]  }
  0x15   :  { %s60_s20 = sshll.u32 %s993_s19, 4  ;;  %s22_s22 = sshll.u32 %s994_s21, 4  ;;  %s61_s20 = int_to_ptr.vmem [resolvable:$true] %s60_s20  ;;  %s23_s22 = int_to_ptr.vmem [resolvable:$true] %s22_s22 }
  0x16   :  { %s872_s25 = scalar_lea.hbm %s1177_s4, 512 }
  0x17   :  { %p873_p8 = scmp.ne.s32.totalorder %s1177_s4, %s872_s25  ;;  %p876_p9 = scmp.lt.u32.totalorder %s872_s25, %s1177_s4 }
  0x19   :  { %p878_p10 = pnand %p876_p9, %p873_p8 }
  0x1b   :  { %881 = shalt.err (!%p878_p10)
}
  0x1c   :  { %s882_s1 = scalar_lea.vmem %s61_s20, 512  ;;  %p887_p12 = scmp.lt.s32.totalorder %s61_s20, %s61_s20 }
  0x1d   :  { %p883_p11 = scmp.ne.s32.totalorder %s61_s20, %s882_s1  ;;  %p888_p13 = scmp.lt.s32.totalorder %s882_s1, %s882_s1 }
  0x1f   :  { %p889_p0 = por %p888_p13, %p887_p12 }
  0x21   :  { %p890_p1 = pnand %p889_p0, %p883_p11 }
  0x23   :  { %893 = shalt.err (!%p890_p1)
}
  0x24   :  { %s995_s28 = smov 128   ;;  %s996_s9 = smov 8  }
  0x25   :  { %66 = dma.hbm_to_vmem [thread:$0]  %s1177_s4, 512, %s61_s20, [#allocation9], %s995_s28, %s995_s28, %s996_s9  }
  0x26   :  { %s894_s14 = scalar_lea.hbm %s1173_s0, 256 }
  0x27   :  { %p895_p2 = scmp.ne.s32.totalorder %s1173_s0, %s894_s14  ;;  %p898_p3 = scmp.lt.u32.totalorder %s894_s14, %s1173_s0 }
  0x29   :  { %p900_p4 = pnand %p898_p3, %p895_p2 }
  0x2b   :  { %903 = shalt.err (!%p900_p4)
}
  0x2c   :  { %s904_s19 = scalar_lea.vmem %s23_s22, 256  ;;  %p909_p6 = scmp.lt.s32.totalorder %s23_s22, %s23_s22 }
  0x2d   :  { %p905_p5 = scmp.ne.s32.totalorder %s23_s22, %s904_s19  ;;  %p910_p7 = scmp.lt.s32.totalorder %s904_s19, %s904_s19 }
  0x2f   :  { %p911_p8 = por %p910_p7, %p909_p6 }
  0x31   :  { %p912_p9 = pnand %p911_p8, %p905_p5 }
  0x33   :  { %915 = shalt.err (!%p912_p9)
}
  0x34   :  { %28 = dma.hbm_to_vmem [thread:$0]  %s1173_s0, 256, %s23_s22, [#allocation3], %s995_s28, %s995_s28, %s996_s9  }
  0x35   :  { %s997_s21 = smov [#allocation7]   ;;  %s998_s24 = smov [#allocation10]  }
  0x36   :  { %s46_s23 = sshll.u32 %s997_s21, 4  ;;  %s74_s25 = sshll.u32 %s998_s24, 4  ;;  %s47_s23 = int_to_ptr.vmem [resolvable:$true] %s46_s23  ;;  %s75_s25 = int_to_ptr.vmem [resolvable:$true] %s74_s25 }
  0x37   :  { %s916_s29 = scalar_lea.hbm %s1175_s2, 512 }
  0x38   :  { %p917_p10 = scmp.ne.s32.totalorder %s1175_s2, %s916_s29  ;;  %p920_p11 = scmp.lt.u32.totalorder %s916_s29, %s1175_s2 }
  0x3a   :  { %p922_p12 = pnand %p920_p11, %p917_p10 }
  0x3c   :  { %925 = shalt.err (!%p922_p12)
}
  0x3d   :  { %s926_s0 = scalar_lea.vmem %s47_s23, 512  ;;  %p931_p0 = scmp.lt.s32.totalorder %s47_s23, %s47_s23 }
  0x3e   :  { %p927_p13 = scmp.ne.s32.totalorder %s47_s23, %s926_s0  ;;  %p932_p1 = scmp.lt.s32.totalorder %s926_s0, %s926_s0 }
  0x40   :  { %p933_p2 = por %p932_p1, %p931_p0 }
  0x42   :  { %p934_p3 = pnand %p933_p2, %p927_p13 }
  0x44   :  { %937 = shalt.err (!%p934_p3)
}
  0x45   :  { %52 = dma.hbm_to_vmem [thread:$0]  %s1175_s2, 512, %s47_s23, [#allocation6], %s995_s28, %s995_s28, %s996_s9  }
  0x46   :  { %s938_s15 = scalar_lea.hbm %s1179_s6, 512 }
  0x47   :  { %p939_p4 = scmp.ne.s32.totalorder %s1179_s6, %s938_s15  ;;  %p942_p5 = scmp.lt.u32.totalorder %s938_s15, %s1179_s6 }
  0x49   :  { %p944_p6 = pnand %p942_p5, %p939_p4 }
  0x4b   :  { %947 = shalt.err (!%p944_p6)
}
  0x4c   :  { %s948_s4 = scalar_lea.vmem %s75_s25, 512  ;;  %p953_p8 = scmp.lt.s32.totalorder %s75_s25, %s75_s25 }
  0x4d   :  { %p949_p7 = scmp.ne.s32.totalorder %s75_s25, %s948_s4  ;;  %p954_p9 = scmp.lt.s32.totalorder %s948_s4, %s948_s4 }
  0x4f   :  { %p955_p10 = por %p954_p9, %p953_p8 }
  0x51   :  { %p956_p11 = pnand %p955_p10, %p949_p7 }
  0x53   :  { %959 = shalt.err (!%p956_p11)
}
  0x54   :  { %80 = dma.hbm_to_vmem [thread:$0]  %s1179_s6, 512, %s75_s25, [#allocation9], %s995_s28, %s995_s28, %s996_s9  }
  0x55   :  { %982 = dma.done.wait [#allocation3], 256  }
  0x56   :  { %983 = vsyncadd [#allocation3], 4294967040 }
  0x57   :  { %984 = dma.done.wait [#allocation6], 640  }
  0x58   :  { %985 = vsyncadd [#allocation6], 4294966656 }
  0x59   :  { %986 = dma.done.wait [#allocation9], 1024  }
  0x5a   :  { %987 = vsyncadd [#allocation9], 4294966272  ;;  %v999_v0 = vmov 0.0|0.0   ;;  %vm1000_vm0 = vmmov 0   ;;  %v1001_v1 = vmov 0.0   ;;  %v100_v2 = vld [vmem:[#allocation7] sm:$0xff] }
  0x5b   :  { %810 = vmatprep.subr.bf16.mxu1 %v999_v0  ;;  %768 = vmatprep.mubr.msk.f32.mxu1 %vm1000_vm0, %v1001_v1  ;;  %v101_v3 = vld [vmem:[#allocation7 + $0x8] sm:$0xff]  ;;  %v102_v4 = vld [vmem:[#allocation7 + $0x10] sm:$0xff]  ;;  %vm111_vm1 = vcmask 261120   ;;  %v103_v6 = vld [vmem:[#allocation7 + $0x18] sm:$0xff]  ;;  %vm438_vm2 = vcmask 60416   ;;  %vm461_vm3 = vcmask 64512  }
  0x5c   :  { %v802_v5 = vpack.c.bf16 %v101_v3, %v100_v2  ;;  %v197_v7 = vld [vmem:[#allocation8] sm:$0xff]  ;;  %v198_v8 = vld [vmem:[#allocation8 + $0x8] sm:$0xff]  ;;  %v806_v9 = vpack.c.bf16 %v103_v6, %v102_v4  ;;  %v199_v12 = vld [vmem:[#allocation8 + $0x10] sm:$0xff]  ;;  %s1002_s23 = smov [#allocation11]  }
  0x5d   :  { %v811_v10 = vpack.c.bf16 %v198_v8, %v197_v7  ;;  %v98_v11 = vld [vmem:[#allocation2] sm:$0xff]  ;;  %v200_v13 = vld [vmem:[#allocation8 + $0x18] sm:$0xff]  ;;  %v99_v16 = vld [vmem:[#allocation2 + $0x8] sm:$0xff]  ;;  %s701_s24 = sshll.u32 %s1002_s23, 4  ;;  %s702_s24 = int_to_ptr.vmem [resolvable:$true] %s701_s24 }
  0x5e   :  { %803 = vmatprep.subr.bf16.mxu0 %v802_v5  ;;  %757 = vmatprep.mubr.msk.f32.mxu0 %vm111_vm1, %v98_v11  ;;  %v814_v14 = vpack.c.bf16 %v200_v13, %v199_v12  ;;  %v835_v15 = vld [vmem:[#allocation5] sm:$0xff]   ;;  %v715_v17 = vld [vmem:[%s1178_s5] ss:$0 sm:$0xff]  ;;  %v608_v54 = vld [vmem:[#allocation10] sm:$0xff]  ;;  %s960_s25 = scalar_lea.vmem %s702_s24, 128  ;;  %p965_p13 = scmp.lt.s32.totalorder %s702_s24, %s702_s24 }
  0x5f   :  { %805 = vmatpush3.bf16.msra.mxu0 %v802_v5  ;;  %812 = vmatpush3.bf16.msra.mxu1 %v811_v10  ;;  %v712_v18 = vld [vmem:[%s1176_s3] ss:$0 sm:$0xff]  ;;  %v610_v57 = vld [vmem:[#allocation10 + $0x10] sm:$0xff]  ;;  %v611_v58 = vld [vmem:[#allocation10 + $0x18] sm:$0xff]  ;;  %p961_p12 = scmp.ne.s32.totalorder %s702_s24, %s960_s25  ;;  %p966_p0 = scmp.lt.s32.totalorder %s960_s25, %s960_s25 }
  0x60   :  { %807 = vmatprep.subr.bf16.mxu0 %v806_v9  ;;  %813 = vmatprep.subr.bf16.mxu1 %v999_v0  ;;  %v609_v55 = vld [vmem:[#allocation10 + $0x8] sm:$0xff]  ;;  %v820_v59 = vpack.c.bf16 %v611_v58, %v610_v57 }
  0x61   :  { %v817_v56 = vpack.c.bf16 %v609_v55, %v608_v54  ;;  %p967_p1 = por %p966_p0, %p965_p13 }
  0x63   :  { %809 = vmatpush3.bf16.msra.mxu0 %v806_v9  ;;  %815 = vmatpush3.bf16.msra.mxu1 %v814_v14  ;;  %p968_p2 = pnand %p967_p1, %p961_p12 }
  0x64   :  { %771 = vmatprep.subr.mxu1 %v1001_v1  ;;  %781 = vmatprep.subr.mxu0 %v1001_v1 }
  0x66   :  { %758 = vmatmul.mubr.msk.f32.vlgmr.msra.gmra.mrb[0].mxu0 %vm111_vm1, %v99_v16  ;;  %769 = vmatmul.mubr.msk.f32.vlgmr.msra.gmra.mrb[0].mxu1 %vm111_vm1, %v835_v15 }
  0x67   :  { %773 = vmatprep.mubr.msk.f32.mxu1 %vm1000_vm0, %v1001_v1  ;;  %783 = vmatprep.mubr.msk.f32.mxu0 %vm1000_vm0, %v1001_v1 }
 0x139   :  { %v759_v19 = vpop.f32.mrb[0].mxu0  ;;  %v279_v20 = vpop.f32.mrb[0].mxu1 }
 0x13a   :  { %v184_v21 = vpop.f32.mrb[1].mxu0  ;;  %v280_v22 = vadd.f32 %v715_v17, %v279_v20  ;;  %v770_v23 = vpop.f32.mrb[1].mxu1  ;;  %v190_v25 = vadd.f32 %v759_v19, %v712_v18 }
 0x13b   :  { %v185_v24 = vadd.f32 %v712_v18, %v184_v21 }
 0x13d   :  { %836 = vtanh.f32 %v185_v24 }
 0x13e   :  { %838 = vtanh.f32 %v280_v22 }
 0x13f   :  { %840 = vtanh.f32 %v190_v25 }
 0x147   :  { %v837_v26 = vpop.eup %836 }
 0x148   :  { %v839_v27 = vpop.eup %838  ;;  %772 = vmatpush3.xpose.msk.msra.mxu1 %vm111_vm1, %v837_v26  ;;  %782 = vmatpush3.msra.mxu0 %v837_v26 }
 0x149   :  { %776 = vmatprep.subr.mxu1 %v1001_v1  ;;  %816 = vmatprep.subr.bf16.mxu0 %v999_v0  ;;  %v841_v28 = vpop.eup %840  ;;  %v285_v29 = vcombine.high %v839_v27, %v839_v27 }
 0x14b   :  { %774 = vmatmul.mubr.msk.f32.vlgmr.msra.gmra.mrb[2].mxu1 %vm111_vm1, %v839_v27 }
 0x14c   :  { %777 = vmatpush3.xpose.msk.msra.mxu1 %vm111_vm1, %v841_v28  ;;  %778 = vmatprep.mubr.msk.f32.mxu1 %vm1000_vm0, %v1001_v1 }
 0x14d   :  { %786 = vmatprep.subr.mxu1 %v1001_v1 }
 0x14f   :  { %779 = vmatmul.mubr.msk.f32.vlgmr.msra.gmra.mrb[4].mxu1 %vm111_vm1, %v285_v29 }
 0x150   :  { %787 = vmatpush3.msra.mxu1 %v841_v28  ;;  %788 = vmatprep.mubr.msk.f32.mxu1 %vm1000_vm0, %v1001_v1 }
 0x21e   :  { %v357_v30 = vpop.f32.mrb[2].mxu1 }
 0x21f   :  { %v436_v31 = vmul.f32 0.17677669, %v357_v30  ;;  %v775_v32 = vpop.f32.mrb[3].mxu1 }
 0x221   :  { %v439_v33 = vsel %vm438_vm2, %v436_v31, -inf }
 0x222   :  { %440 = vmax.xlane.f32.xlu0 %v439_v33  ;;  %v432_v34 = vpop.f32.mrb[4].mxu1 }
 0x223   :  { %v437_v35 = vmul.f32 0.17677669, %v432_v34  ;;  %v780_v36 = vpop.f32.mrb[5].mxu1 }
 0x225   :  { %v442_v37 = vsel %vm438_vm2, %v437_v35, -inf }
 0x226   :  { %443 = vmax.xlane.f32.xlu0 %v442_v37 }
 0x2af   :  { %v441_v38 = vpop.xlane.xlu0 %440 }
 0x2b0   :  { %v445_v39 = vsub.f32 %v436_v31, %v441_v38 }
 0x2b2   :  { %v447_v40 = vmul.f32 1.442695, %v445_v39 }
 0x2b3   :  { %v444_v41 = vpop.xlane.xlu0 %443 }
 0x2b4   :  { %842 = vpow2.f32 %v447_v40  ;;  %v446_v42 = vsub.f32 %v437_v35, %v444_v41 }
 0x2b6   :  { %v449_v43 = vmul.f32 1.442695, %v446_v42 }
 0x2b8   :  { %844 = vpow2.f32 %v449_v43 }
 0x2be   :  { %v843_v44 = vpop.eup %842 }
 0x2bf   :  { %v451_v45 = vsel %vm438_vm2, %v843_v44, 0.0 }
 0x2c0   :  { %452 = vadd.xlane.f32.xlu1 %v451_v45 }
 0x2c2   :  { %v845_v46 = vpop.eup %844 }
 0x2c3   :  { %v454_v47 = vsel %vm438_vm2, %v845_v46, 0.0 }
 0x2c4   :  { %455 = vadd.xlane.f32.xlu1 %v454_v47 }
 0x34d   :  { %v453_v48 = vpop.xlane.xlu1 %452 }
 0x34e   :  { %846 = vrcp.f32 %v453_v48 }
 0x351   :  { %v456_v49 = vpop.xlane.xlu1 %455 }
 0x352   :  { %848 = vrcp.f32 %v456_v49 }
 0x358   :  { %v847_v50 = vpop.eup %846 }
 0x359   :  { %v459_v51 = vmul.f32 %v847_v50, %v843_v44 }
 0x35b   :  { %784 = vmatmul.mubr.msk.f32.vlgmr.msra.gmra.mrb[2].mxu0 %vm461_vm3, %v459_v51 }
 0x35c   :  { %v849_v52 = vpop.eup %848  ;;  %799 = vmatprep.mubr.msk.f32.mxu0 %vm1000_vm0, %v1001_v1  ;;  %818 = vmatpush3.bf16.msra.mxu0 %v817_v56  ;;  %v723_v1 = vld [vmem:[%s1180_s7] ss:$0 sm:$0xff] }
 0x35d   :  { %v460_v53 = vmul.f32 %v849_v52, %v845_v46  ;;  %819 = vmatprep.subr.bf16.mxu0 %v999_v0 }
 0x35f   :  { %789 = vmatmul.mubr.msk.f32.vlgmr.msra.gmra.mrb[6].mxu1 %vm461_vm3, %v460_v53 }
 0x360   :  { %821 = vmatpush3.bf16.msra.mxu0 %v820_v59 }
 0x42e   :  { %v531_v60 = vpop.f32.mrb[2].mxu0 }
 0x42f   :  { %v785_v61 = vpop.f32.mrb[3].mxu0 }
 0x432   :  { %v604_v62 = vpop.f32.mrb[6].mxu1 }
 0x433   :  { %v621_v63 = vcombine.low %v531_v60, %v604_v62  ;;  %v790_v2 = vpop.f32.mrb[7].mxu1 }
 0x435   :  { %800 = vmatmul.mubr.msk.f32.vlgmr.msra.gmra.mrb[4].mxu0 %vm111_vm1, %v621_v63 }
 0x508   :  { %v690_v3 = vpop.f32.mrb[4].mxu0 }
 0x509   :  { %v691_v4 = vadd.f32 %v723_v1, %v690_v3  ;;  %v801_v0 = vpop.f32.mrb[5].mxu0 }
 0x50b   :  { %694 = vst [vmem:[#allocation11] sm:$0xff] %v691_v4 }
 0x50c   :  { %971 = shalt.err (!%p968_p2)
}
 0x50d   :  { %s972_s29 = scalar_lea.hbm %s1181_s8, 128 }
 0x50e   :  { %p973_p3 = scmp.ne.s32.totalorder %s1181_s8, %s972_s29  ;;  %p976_p4 = scmp.lt.u32.totalorder %s972_s29, %s1181_s8 }
 0x510   :  { %p978_p5 = pnand %p976_p4, %p973_p3 }
 0x512   :  { %981 = shalt.err (!%p978_p5)
}
 0x513   :  { %704 = dma.vmem_to_hbm [thread:$0]  %s702_s24, 128, %s1181_s8, [#allocation4]  }
 0x514   :  { %988 = dma.done.wait [#allocation4], 128  }
 0x515   :  { %989 = vsyncadd [#allocation4], 4294967168 }
 0x516   :  { %708 = vsyncpa [#allocation3], 1 }
 0x517   :  { %709 = vsyncpa [#allocation6], 1 }
 0x518   :  { %710 = vsyncpa [#allocation9], 1 }
 0x519   :  { %711 = vsyncpa [#allocation4], 1 }

</bundles_post_ra>
